<compile_context>
chip_gen: v5e
topology: v5e:2x2
jax: 0.10.0
libtpu: 0.0.40
codegen_flags: <defaults>
</compile_context>

<pallas_src>
import functools
import math

import jax
import jax.numpy as jnp
from jax.experimental import pallas as pl
from jax.experimental.pallas import tpu as pltpu


def fm_kernel(x_ref, o_ref, *, num_fields, d_pad):
    """x_ref: (tb, F*d_pad) lane-dense tile. o_ref: (tb, 1) f32."""
    fd = num_fields * d_pad
    x = x_ref[...]  # stay in input dtype: bf16 rolls move 2x data per vrot

    # --- circular field-sum via a log2(F) rotate-and-add tree -----------------
    # Want s[f*d_pad + d] = sum_g x[g*d_pad + d]  (all fields, incl. f itself).
    # `block` holds the sum of k_size consecutive field-rotations of x; set
    # bits of F splice rotated blocks into `res` (binary decomposition of F).
    res = None
    offset = 0           # rotations already folded into `res`
    block = x            # sum of k_size consecutive rotations
    k_size = 1
    rem = num_fields
    while rem:
        if rem & 1:
            piece = block if offset == 0 else pltpu.roll(block, offset * d_pad, axis=1)
            res = piece if res is None else res + piece
            offset += k_size
        rem >>= 1
        if rem:
            block = block + pltpu.roll(block, k_size * d_pad, axis=1)
            k_size *= 2

    # --- 0.5 * sum_lanes( x * (s - x) ) == FM output ---------------------------
    # Upcast in-register only; pairwise product and reduction stay f32.
    xs = x.astype(jnp.float32)
    y = xs * (res.astype(jnp.float32) - xs)

    # Lane reduction on the otherwise-idle MXU (f32 accumulate); all 128 output
    # columns are identical, keep column 0.
    ones = jnp.ones((fd, 128), jnp.float32)
    r = jnp.dot(y, ones, preferred_element_type=jnp.float32)
    o_ref[...] = 0.5 * r[:, :1]


def _round_up(a, m):
    return (a + m - 1) // m * m


def factorization_machine(x, *, tb=16384):
    """x: (B, F, D) float32/bfloat16 -> (B, 1) float32 (reduce_sum=True)."""
    B, F, D = x.shape
    itemsize = jnp.dtype(x.dtype).itemsize

    # --- lane alignment: pad D (never F) so F*D_pad % 128 == 0 ----------------
    g = 128 // math.gcd(F, 128)
    d_pad = _round_up(D, g)
    fd = F * d_pad

    # --- batch-tile selection --------------------------------------------------
    SUB = 32                     # sublane granularity safe for f32 / bf16 / int8
    LANE_ROW = 128 * 4           # one lane-padded f32 row (the (tb,1) buffers)
    row_io = 2 * fd * itemsize + 2 * LANE_ROW              # dbl-buffered in+out
    row_tmp = 2 * fd * itemsize + 2 * fd * 4 + LANE_ROW    # tree temps + f32 temps + dot result
    budget = 40 << 20            # stays well inside v7x's 64 MiB physical VMEM

    tb = max(SUB, (int(tb) // SUB) * SUB)
    tb_cap = max(SUB, (budget // (row_io + row_tmp)) // SUB * SUB)
    tb = min(tb, tb_cap, _round_up(B, SUB))
    if B > 4 * SUB:
        # Keep grid >= 2 so both v7x TensorCores get work (megacore sharding).
        tb = min(tb, _round_up(pl.cdiv(B, 2), SUB))
    tb = max(SUB, tb)

    grid = pl.cdiv(B, tb)
    b_pad = grid * tb

    # --- lane-dense layout + zero padding in the wrapper ----------------------
    x3 = x
    if d_pad != D:
        x3 = jnp.pad(x3, ((0, 0), (0, 0), (0, d_pad - D)))   # zero lanes are inert
    x2 = x3.reshape(B, fd)
    if b_pad != B:
        x2 = jnp.pad(x2, ((0, b_pad - B), (0, 0)))           # zero rows contribute 0

    vmem_bytes = int(min(max(tb * (row_io + row_tmp) + (4 << 20), 16 << 20), 48 << 20))

    kernel = functools.partial(fm_kernel, num_fields=F, d_pad=d_pad)

    out = pl.pallas_call(
        kernel,
        out_shape=jax.ShapeDtypeStruct((b_pad, 1), jnp.float32),
        grid_spec=pltpu.PrefetchScalarGridSpec(
            num_scalar_prefetch=0,
            grid=(grid,),
            in_specs=[pl.BlockSpec((tb, fd), lambda i: (i, 0))],
            out_specs=pl.BlockSpec((tb, 1), lambda i: (i, 0)),
        ),
        compiler_params=pltpu.CompilerParams(
            dimension_semantics=("parallel",),
            vmem_limit_bytes=vmem_bytes,
        ),
        cost_estimate=pl.CostEstimate(
            flops=2 * b_pad * fd * 128 + 6 * b_pad * fd,
            transcendentals=0,
            bytes_accessed=b_pad * fd * itemsize + b_pad * 4,
        ),
    )(x2)

    return out[:B]


def fm_reference(x):
    x = x.astype(jnp.float32)
    square_of_sum = jnp.sum(x, axis=1) ** 2
    sum_of_square = jnp.sum(x ** 2, axis=1)
    ix = square_of_sum - sum_of_square
    return 0.5 * jnp.sum(ix, axis=1, keepdims=True)


if __name__ == "__main__":
    key = jax.random.PRNGKey(0)

    # Small demo shape consistent with the module: (batch, num_fields, embed_dim)
    B, F, D = 32, 4, 32
    x = jax.random.normal(key, (B, F, D), dtype=jnp.float32)

    out = jax.block_until_ready(factorization_machine(x))
    ref = fm_reference(x)
    assert out.shape == (B, 1), out.shape
    assert jnp.allclose(out, ref, atol=1e-4, rtol=1e-4), (out, ref)

    # Non-divisible batch: exercises the padded-tail path and a multi-step grid.
    B2 = 100
    x_tail = jax.random.normal(jax.random.PRNGKey(0), (B2, F, D), dtype=jnp.float32)
    out_tail = jax.block_until_ready(factorization_machine(x_tail, tb=64))
    ref_tail = fm_reference(x_tail)
    assert out_tail.shape == (B2, 1), out_tail.shape
    assert jnp.allclose(out_tail, ref_tail, atol=1e-4, rtol=1e-4)

    # bf16 input: DMA/VMEM/XLU stay bf16 (field-sum tree accumulates in bf16),
    # pairwise product + reduction in f32 -> use bf16-accumulation tolerances.
    xb = x.astype(jnp.bfloat16)
    out_bf16 = jax.block_until_ready(factorization_machine(xb))
    ref_bf16 = fm_reference(xb)
    assert jnp.allclose(out_bf16, ref_bf16, atol=0.25, rtol=5e-2), (out_bf16, ref_bf16)

    # Odd (F, D) not multiples of 128: exercises the D-padding guard and the
    # non-power-of-two roll tree (F=3: one doubling + one splice roll).
    B3, F3, D3 = 40, 3, 24
    x_odd = jax.random.normal(jax.random.PRNGKey(0), (B3, F3, D3), dtype=jnp.float32)
    out_odd = jax.block_until_ready(factorization_machine(x_odd))
    ref_odd = fm_reference(x_odd)
    assert out_odd.shape == (B3, 1), out_odd.shape
    assert jnp.allclose(out_odd, ref_odd, atol=1e-4, rtol=1e-4)

    print("KERNEL_OK")
</pallas_src>

<mosaic_0001>
module attributes {stable_mosaic.version = 11 : i64} {
  func.func @fm_kernel(%arg0: i32, %arg1: memref<32x128xf32, #tpu.memory_space<vmem>>, %arg2: memref<32x1xf32, #tpu.memory_space<vmem>>) attributes {dimension_semantics = [#tpu.dimension_semantics<parallel>], iteration_bounds = array<i64: 1>, scalar_prefetch = 0 : i64, scratch_operands = 0 : i64, tpu.core_type = #tpu.core_type<tc>, window_params = [{transform_indices = @transform_0, window_bounds = array<i64: 32, 128>}, {transform_indices = @transform_1, window_bounds = array<i64: 32, 1>}]} {
    %c0 = arith.constant 0 : index
    %c0_0 = arith.constant 0 : index
    %0 = vector.load %arg1[%c0, %c0_0] : memref<32x128xf32, #tpu.memory_space<vmem>>, vector<32x128xf32>
    %c32_i32 = arith.constant 32 : i32
    %1 = tpu.dynamic_rotate %0 by %c32_i32 dim 1 : vector<32x128xf32>, i32 -> vector<32x128xf32>
    %2 = arith.addf %0, %1 : vector<32x128xf32>
    %c64_i32 = arith.constant 64 : i32
    %3 = tpu.dynamic_rotate %2 by %c64_i32 dim 1 : vector<32x128xf32>, i32 -> vector<32x128xf32>
    %4 = arith.addf %2, %3 : vector<32x128xf32>
    %5 = arith.subf %4, %0 : vector<32x128xf32>
    %6 = arith.mulf %0, %5 : vector<32x128xf32>
    %cst = arith.constant 1.000000e+00 : f32
    %7 = vector.broadcast %cst : f32 to vector<128x128xf32>
    %cst_1 = arith.constant dense<0.000000e+00> : vector<32x128xf32>
    %8 = tpu.matmul %6, %7, %cst_1 {dimension_numbers = #tpu.dot_dimension_numbers<[1], [0], [0], [1], [0, 0, 1, 1], [], []>} : vector<32x128xf32>, vector<128x128xf32>, vector<32x128xf32> -> vector<32x128xf32>
    %9 = vector.extract_strided_slice %8 {offsets = [0, 0], sizes = [32, 1], strides = [1, 1]} : vector<32x128xf32> to vector<32x1xf32>
    %cst_2 = arith.constant 5.000000e-01 : f32
    %10 = vector.broadcast %cst_2 : f32 to vector<32x1xf32>
    %11 = arith.mulf %10, %9 : vector<32x1xf32>
    %c0_3 = arith.constant 0 : index
    %c0_4 = arith.constant 0 : index
    %12 = vector.load %arg2[%c0_3, %c0_4] : memref<32x1xf32, #tpu.memory_space<vmem>>, vector<32x1xf32>
    tpu.vector_store %arg2[%c0_3, %c0_4], %11 {strides = array<i32>} : memref<32x1xf32, #tpu.memory_space<vmem>>, vector<32x1xf32>,
    return
  }
  func.func @transform_0(%arg0: i32) -> (i32, i32) {
    %c0_i32 = arith.constant 0 : i32
    %c0_i32_0 = arith.constant 0 : i32
    return %arg0, %c0_i32 : i32, i32
  }
  func.func @transform_1(%arg0: i32) -> (i32, i32) {
    %c0_i32 = arith.constant 0 : i32
    %c0_i32_0 = arith.constant 0 : i32
    return %arg0, %c0_i32 : i32, i32
  }
}

</mosaic_0001>

<bundles_post_ra>
// kernel: tpu_custom_call.1
= control target key start
LH: loop header
LB: loop body
LE: loop exit
PB: predicated region body
PF: predicated region fallthrough
CT: control target
= control target key end

     0   :  { %6 = vsyncpa [#allocation3], 0  ;;  %s183_s9 = smov [#allocation2]   ;;  %s184_s11 = smov 128   ;;  %s302_s0 = inlined_call_operand.hbm [shape: f32[32,128], index: 0, kind: input, shape index: {}]   ;;  %s303_s1 = inlined_call_operand.vmem [shape: f32[32,1], index: 1, kind: output, shape index: {}]  }
   0x1   :  { %s11_s8 = sshll.u32 %s302_s0, 4  ;;  %s13_s10 = sshll.u32 %s183_s9, 4  ;;  %s12_s8 = int_to_ptr.hbm [resolvable:$true] %s11_s8  ;;  %s14_s10 = int_to_ptr.vmem [resolvable:$true] %s13_s10 }
   0x2   :  { %s185_s12 = smov 8  }
   0x3   :  { %19 = dma.hbm_to_vmem [thread:$0]  %s12_s8, 512, %s14_s10, [#allocation3], %s184_s11, %s184_s11, %s185_s12  }
   0x4   :  { %181 = dma.done.wait [#allocation3], 512  }
   0x5   :  { %182 = vsyncadd [#allocation3], 4294966784  ;;  %v202_v0 = vld [vmem:[#allocation2 + $0x10] sm:$0xff]  ;;  %v204_v1 = vld [vmem:[#allocation2] sm:$0xff]  ;;  %s186_s13 = smov 32   ;;  %v187_v4 = vmov 1.0  }
   0x6   :  { %32 = vrot.lane.b32.xlu0 %v202_v0, %s186_s13  ;;  %28 = vrot.lane.b32.xlu1 %v204_v1, %s186_s13  ;;  %v208_v2 = vld [vmem:[#allocation2 + $0x18] sm:$0xff]  ;;  %v210_v3 = vld [vmem:[#allocation2 + $0x8] sm:$0xff]  ;;  %s188_s0 = smov 64   ;;  %vm93_vm0 = vcmask 7168  }
   0x7   :  { %104 = vmatpush.msra.mxu2 %v187_v4  ;;  %105 = vmatpush.msra.mxu3 %v187_v4 }
   0x8   :  { %60 = vmatpush.msra.mxu0 %v187_v4  ;;  %103 = vmatpush.msra.mxu1 %v187_v4 }
   0x9   :  { %107 = vmatpush.msra.mxu2 %v187_v4  ;;  %108 = vmatpush.msra.mxu3 %v187_v4 }
   0xa   :  { %61 = vmatpush.msra.mxu0 %v187_v4  ;;  %106 = vmatpush.msra.mxu1 %v187_v4 }
   0xb   :  { %110 = vmatpush.msra.mxu2 %v187_v4  ;;  %111 = vmatpush.msra.mxu3 %v187_v4 }
   0xc   :  { %62 = vmatpush.msra.mxu0 %v187_v4  ;;  %109 = vmatpush.msra.mxu1 %v187_v4 }
   0xd   :  { %113 = vmatpush.msra.mxu2 %v187_v4  ;;  %114 = vmatpush.msra.mxu3 %v187_v4 }
   0xe   :  { %34 = vrot.lane.b32.xlu0 %v208_v2, %s186_s13  ;;  %30 = vrot.lane.b32.xlu1 %v210_v3, %s186_s13 }
   0xf   :  { %63 = vmatpush.msra.mxu0 %v187_v4  ;;  %112 = vmatpush.msra.mxu1 %v187_v4 }
  0x10   :  { %116 = vmatpush.msra.mxu2 %v187_v4  ;;  %117 = vmatpush.msra.mxu3 %v187_v4 }
  0x11   :  { %64 = vmatpush.msra.mxu0 %v187_v4  ;;  %115 = vmatpush.msra.mxu1 %v187_v4 }
  0x12   :  { %119 = vmatpush.msra.mxu2 %v187_v4  ;;  %120 = vmatpush.msra.mxu3 %v187_v4 }
  0x13   :  { %65 = vmatpush.msra.mxu0 %v187_v4  ;;  %118 = vmatpush.msra.mxu1 %v187_v4 }
  0x14   :  { %122 = vmatpush.msra.mxu2 %v187_v4  ;;  %123 = vmatpush.msra.mxu3 %v187_v4 }
  0x15   :  { %66 = vmatpush.msra.mxu0 %v187_v4  ;;  %121 = vmatpush.msra.mxu1 %v187_v4 }
  0x16   :  { %125 = vmatpush.msra.mxu2 %v187_v4  ;;  %126 = vmatpush.msra.mxu3 %v187_v4 }
  0x17   :  { %67 = vmatpush.msra.mxu0 %v187_v4  ;;  %124 = vmatpush.msra.mxu1 %v187_v4 }
  0x18   :  { %128 = vmatpush.msra.mxu2 %v187_v4  ;;  %129 = vmatpush.msra.mxu3 %v187_v4 }
  0x19   :  { %68 = vmatpush.msra.mxu0 %v187_v4  ;;  %127 = vmatpush.msra.mxu1 %v187_v4 }
  0x1a   :  { %131 = vmatpush.msra.mxu2 %v187_v4  ;;  %132 = vmatpush.msra.mxu3 %v187_v4 }
  0x1b   :  { %69 = vmatpush.msra.mxu0 %v187_v4  ;;  %130 = vmatpush.msra.mxu1 %v187_v4 }
  0x1c   :  { %134 = vmatpush.msra.mxu2 %v187_v4  ;;  %135 = vmatpush.msra.mxu3 %v187_v4 }
  0x1d   :  { %70 = vmatpush.msra.mxu0 %v187_v4  ;;  %133 = vmatpush.msra.mxu1 %v187_v4 }
  0x1e   :  { %137 = vmatpush.msra.mxu2 %v187_v4  ;;  %138 = vmatpush.msra.mxu3 %v187_v4 }
  0x1f   :  { %71 = vmatpush.msra.mxu0 %v187_v4  ;;  %136 = vmatpush.msra.mxu1 %v187_v4 }
  0x20   :  { %140 = vmatpush.msra.mxu2 %v187_v4  ;;  %141 = vmatpush.msra.mxu3 %v187_v4 }
  0x21   :  { %72 = vmatpush.msra.mxu0 %v187_v4  ;;  %139 = vmatpush.msra.mxu1 %v187_v4 }
  0x22   :  { %143 = vmatpush.msra.mxu2 %v187_v4  ;;  %144 = vmatpush.msra.mxu3 %v187_v4 }
  0x23   :  { %73 = vmatpush.msra.mxu0 %v187_v4  ;;  %142 = vmatpush.msra.mxu1 %v187_v4 }
  0x24   :  { %146 = vmatpush.msra.mxu2 %v187_v4  ;;  %147 = vmatpush.msra.mxu3 %v187_v4 }
  0x25   :  { %74 = vmatpush.msra.mxu0 %v187_v4  ;;  %145 = vmatpush.msra.mxu1 %v187_v4 }
  0x26   :  { %149 = vmatpush.msra.mxu2 %v187_v4  ;;  %150 = vmatpush.msra.mxu3 %v187_v4 }
  0x27   :  { %75 = vmatpush.msra.mxu0 %v187_v4  ;;  %148 = vmatpush.msra.mxu1 %v187_v4 }
  0x78   :  { %v33_v5 = vpop.permute.xlu0 %32  ;;  %v29_v6 = vpop.permute.xlu1 %28 }
  0x79   :  { %v38_v7 = vadd.f32 %v33_v5, %v202_v0  ;;  %v36_v8 = vadd.f32 %v29_v6, %v204_v1 }
  0x7b   :  { %44 = vrot.lane.b32.xlu2 %v38_v7, %s188_s0  ;;  %40 = vrot.lane.b32.xlu0 %v36_v8, %s188_s0 }
  0x80   :  { %v35_v9 = vpop.permute.xlu0 %34  ;;  %v31_v10 = vpop.permute.xlu1 %30 }
  0x81   :  { %v39_v11 = vadd.f32 %v35_v9, %v208_v2  ;;  %v37_v12 = vadd.f32 %v31_v10, %v210_v3 }
  0x83   :  { %46 = vrot.lane.b32.xlu2 %v39_v11, %s188_s0  ;;  %42 = vrot.lane.b32.xlu1 %v37_v12, %s188_s0 }
  0xd5   :  { %v45_v13 = vpop.permute.xlu2 %44 }
  0xd6   :  { %v50_v14 = vadd.f32 %v45_v13, %v38_v7 }
  0xd8   :  { %v54_v15 = vsub.f32 %v50_v14, %v202_v0 }
  0xda   :  { %v58_v16 = vmul.f32 %v54_v15, %v202_v0 }
  0xdc   :  { %82 = vmatmul.f32.vlgmr.msra.gmra.mxu2 %v58_v16 }
  0xdd   :  { %v47_v17 = vpop.permute.xlu2 %46 }
  0xde   :  { %v51_v18 = vadd.f32 %v47_v17, %v39_v11 }
  0xe0   :  { %v55_v19 = vsub.f32 %v51_v18, %v208_v2 }
  0xe2   :  { %v59_v20 = vmul.f32 %v55_v19, %v208_v2 }
  0xe4   :  { %85 = vmatmul.f32.vlgmr.msra.gmra.mxu3 %v59_v20 }
  0xed   :  { %v41_v21 = vpop.permute.xlu0 %40 }
  0xee   :  { %v48_v22 = vadd.f32 %v41_v21, %v36_v8 }
  0xf0   :  { %v52_v23 = vsub.f32 %v48_v22, %v204_v1 }
  0xf2   :  { %v56_v24 = vmul.f32 %v52_v23, %v204_v1 }
  0xf4   :  { %76 = vmatmul.f32.vlgmr.msra.gmra.mxu0 %v56_v24 }
  0xf5   :  { %v43_v25 = vpop.permute.xlu1 %42 }
  0xf6   :  { %v49_v26 = vadd.f32 %v43_v25, %v37_v12 }
  0xf8   :  { %v53_v27 = vsub.f32 %v49_v26, %v210_v3 }
  0xfa   :  { %v57_v28 = vmul.f32 %v53_v27, %v210_v3 }
  0xfc   :  { %79 = vmatmul.f32.vlgmr.msra.gmra.mxu1 %v57_v28 }
 0x15f   :  { %v83_v29 = vpop.f32.mrf.mxu2 }
 0x160   :  { %v91_v30 = vmul.f32 0.5, %v83_v29 }
 0x162   :  { %96 = vst.msk [vmem:[%s303_s1 + $0x10] sm:$0xff] %vm93_vm0, %v91_v30 }
 0x167   :  { %v86_v31 = vpop.f32.mrf.mxu3 }
 0x168   :  { %v92_v32 = vmul.f32 0.5, %v86_v31 }
 0x16a   :  { %97 = vst.msk [vmem:[%s303_s1 + $0x18] sm:$0xff] %vm93_vm0, %v92_v32 }
 0x171   :  { %v77_v33 = vpop.f32.mrf.mxu0 }
 0x172   :  { %v89_v34 = vmul.f32 0.5, %v77_v33 }
 0x174   :  { %94 = vst.msk [vmem:[%s303_s1] sm:$0xff] %vm93_vm0, %v89_v34 }
 0x179   :  { %v80_v35 = vpop.f32.mrf.mxu1 }
 0x17a   :  { %v90_v36 = vmul.f32 0.5, %v80_v35 }
 0x17c   :  { %95 = vst.msk [vmem:[%s303_s1 + $0x8] sm:$0xff] %vm93_vm0, %v90_v36 }
 0x17d   :  { %102 = vsyncpa [#allocation3], 1 }

</bundles_post_ra>
